<compile_context>
chip_gen: v7x
topology: tpu7x:2x2x1
jax: 0.10.0
libtpu: 0.0.40
codegen_flags: <defaults>
</compile_context>

<pallas_src>
import functools

import jax
import jax.numpy as jnp
from jax import lax
from jax.experimental import pallas as pl
from jax.experimental.pallas import tpu as pltpu


def _pooler_max_kernel(seq_ref, amask_ref, w_ref, b_ref, out_ref, acc_ref,
                       *, tb, tt, d_in, d_proj):
    # seq_ref  : (TB, TT, D_in)   tile of the sequence
    # amask_ref: (TB, TT, 1)      additive mask (0 valid / -inf pad)
    # w_ref    : (D_proj, D_in)   full Linear weight (PyTorch layout)
    # b_ref    : (1, D_proj)      bias
    # out_ref  : (TB, D_proj)     pooled output (written on last T tile)
    # acc_ref  : (TB, D_proj) f32 running-max accumulator (VMEM scratch)
    t = pl.program_id(1)

    @pl.when(t == 0)
    def _():
        acc_ref[...] = jnp.full_like(acc_ref, -jnp.inf)

    # Pack TB*TT rows into one big MXU matmul: x @ W^T, contracting D_in of both
    # operands directly (no materialized weight transpose).
    x = seq_ref[...].reshape(tb * tt, d_in)
    proj = lax.dot_general(
        x, w_ref[...],
        dimension_numbers=(((1,), (1,)), ((), ())),
        preferred_element_type=jnp.float32)                    # (TB*TT, D_proj)

    # masked_fill(-inf) via an additive 0/-inf mask (precomputed in the wrapper).
    proj = proj + amask_ref[...].reshape(tb * tt, 1)

    # Per-batch-row max over this sequence tile, folded into the running max.
    tile_max = jnp.max(proj.reshape(tb, tt, d_proj), axis=1)   # (TB, D_proj)
    acc_ref[...] = jnp.maximum(acc_ref[...], tile_max)

    # Finalize: add the bias once per output row (max(xW + b) == max(xW) + b).
    @pl.when(t == pl.num_programs(1) - 1)
    def _():
        out_ref[...] = (acc_ref[...] + b_ref[...]).astype(out_ref.dtype)


def _pick_seq_tile(T, tt_max):
    """Largest divisor of T that is <= tt_max and a multiple of 8 (or T itself)."""
    for tt in range(min(T, tt_max), 0, -1):
        if T % tt == 0 and (tt % 8 == 0 or tt == T):
            return tt
    return T


def _pick_batch_tile(B, tb_max):
    """Largest divisor of B that is <= tb_max and a multiple of 8 (or B itself)."""
    for tb in range(min(B, max(1, tb_max)), 0, -1):
        if B % tb == 0 and (tb % 8 == 0 or tb == B):
            return tb
    return B


def pooler_forward(sequence, mask, weight, bias, *, target_rows=256, tt_max=512):
    """Pooler(project=True, pool_type='max') forward.

    sequence: (B, T, D_in) float
    mask:     (B, T) or (B, T, 1); nonzero = valid, 0 = pad
    weight:   (D_proj, D_in)  (PyTorch nn.Linear layout)
    bias:     (D_proj,)
    returns:  (B, D_proj)
    """
    B, T, D_in = sequence.shape
    D_proj = weight.shape[0]

    if mask.ndim == 3:
        mask = mask[..., 0]
    # Additive mask: 0 where valid, -inf where padded.  (B, T, 1)
    add_mask = jnp.where(mask == 0, -jnp.inf, 0.0).astype(jnp.float32)[..., None]

    # Tile sizes: TT bounds the per-step VMEM footprint (T is a reduction axis),
    # TB packs batch rows so that TB*TT ~ target_rows feeds the MXU per step.
    TT = _pick_seq_tile(T, tt_max)
    TB = _pick_batch_tile(B, target_rows // TT)
    grid = (B // TB, T // TT)

    bias2d = bias.reshape(1, D_proj)

    kernel = functools.partial(
        _pooler_max_kernel, tb=TB, tt=TT, d_in=D_in, d_proj=D_proj)

    out = pl.pallas_call(
        kernel,
        out_shape=jax.ShapeDtypeStruct((B, D_proj), sequence.dtype),
        grid_spec=pltpu.PrefetchScalarGridSpec(
            num_scalar_prefetch=0,
            grid=grid,
            in_specs=[
                pl.BlockSpec((TB, TT, D_in), lambda b, t: (b, t, 0)),
                pl.BlockSpec((TB, TT, 1), lambda b, t: (b, t, 0)),
                pl.BlockSpec((D_proj, D_in), lambda b, t: (0, 0)),
                pl.BlockSpec((1, D_proj), lambda b, t: (0, 0)),
            ],
            out_specs=pl.BlockSpec((TB, D_proj), lambda b, t: (b, 0)),
            scratch_shapes=[pltpu.VMEM((TB, D_proj), jnp.float32)],
        ),
        compiler_params=pltpu.CompilerParams(
            dimension_semantics=("parallel", "arbitrary")),
    )(sequence, add_mask, weight, bias2d)

    return out


if __name__ == "__main__":
    B, T, D_IN, D_PROJ = 2, 8, 32, 128

    key = jax.random.PRNGKey(0)
    k_seq, k_w, k_b = jax.random.split(key, 3)

    sequence = jax.random.normal(k_seq, (B, T, D_IN), dtype=jnp.float32)

    # Deterministic Linear(d_inp=32, d_proj=128) parameters (PyTorch layout).
    weight = jax.random.normal(k_w, (D_PROJ, D_IN), dtype=jnp.float32) * 0.05
    bias = jax.random.normal(k_b, (D_PROJ,), dtype=jnp.float32) * 0.05

    # Mask with some padded positions (valid lengths 6 and 8).
    valid_len = jnp.array([6, 8], dtype=jnp.int32)
    mask = (jnp.arange(T)[None, :] < valid_len[:, None]).astype(jnp.float32)  # (B, T)

    out = pooler_forward(sequence, mask, weight, bias)
    out = jax.block_until_ready(out)

    # Pure-JAX reference (same semantics as the PyTorch forward).
    proj_ref = sequence @ weight.T + bias
    proj_ref = jnp.where(mask[..., None] == 0, -jnp.inf, proj_ref)
    ref = jnp.max(proj_ref, axis=1)

    assert out.shape == (B, D_PROJ)
    assert jnp.allclose(out, ref, atol=1e-5, rtol=1e-5)

    print("KERNEL_OK")
</pallas_src>

<mosaic_0001>
module attributes {stable_mosaic.version = 11 : i64} {
  func.func @_pooler_max_kernel(%arg0: i32, %arg1: i32, %arg2: memref<2x8x32xf32, #tpu.memory_space<vmem>>, %arg3: memref<2x8x1xf32, #tpu.memory_space<vmem>>, %arg4: memref<128x32xf32, #tpu.memory_space<vmem>>, %arg5: memref<1x128xf32, #tpu.memory_space<vmem>>, %arg6: memref<2x128xf32, #tpu.memory_space<vmem>>, %arg7: memref<2x128xf32, #tpu.memory_space<vmem>>) attributes {dimension_semantics = [#tpu.dimension_semantics<parallel>, #tpu.dimension_semantics<arbitrary>], iteration_bounds = array<i64: 1, 1>, scalar_prefetch = 0 : i64, scratch_operands = 1 : i64, tpu.core_type = #tpu.core_type<tc>, window_params = [{transform_indices = @transform_0, window_bounds = array<i64: 2, 8, 32>}, {transform_indices = @transform_1, window_bounds = array<i64: 2, 8, 1>}, {pipeline_mode = #tpu.pipeline_mode<synchronous>, transform_indices = @transform_2, window_bounds = array<i64: 128, 32>}, {pipeline_mode = #tpu.pipeline_mode<synchronous>, transform_indices = @transform_3, window_bounds = array<i64: 1, 128>}, {transform_indices = @transform_4, window_bounds = array<i64: 2, 128>}]} {
    %c0_i32 = arith.constant 0 : i32
    %0 = arith.cmpi eq, %arg1, %c0_i32 : i32
    %1 = arith.extui %0 : i1 to i32
    %c0_i32_0 = arith.constant 0 : i32
    %2 = arith.cmpi ne, %1, %c0_i32_0 : i32
    scf.if %2 {
      %cst_15 = arith.constant 0xFF800000 : f32
      %19 = vector.broadcast %cst_15 : f32 to vector<2x128xf32>
      %c0_16 = arith.constant 0 : index
      %c0_17 = arith.constant 0 : index
      %20 = vector.load %arg7[%c0_16, %c0_17] : memref<2x128xf32, #tpu.memory_space<vmem>>, vector<2x128xf32>
      tpu.vector_store %arg7[%c0_16, %c0_17], %19 {strides = array<i32>} : memref<2x128xf32, #tpu.memory_space<vmem>>, vector<2x128xf32>,
    } else {
    }
    %c0 = arith.constant 0 : index
    %c0_1 = arith.constant 0 : index
    %c0_2 = arith.constant 0 : index
    %3 = vector.load %arg2[%c0, %c0_1, %c0_2] : memref<2x8x32xf32, #tpu.memory_space<vmem>>, vector<2x8x32xf32>
    %4 = vector.shape_cast %3 : vector<2x8x32xf32> to vector<16x32xf32>
    %c0_3 = arith.constant 0 : index
    %c0_4 = arith.constant 0 : index
    %5 = vector.load %arg4[%c0_3, %c0_4] : memref<128x32xf32, #tpu.memory_space<vmem>>, vector<128x32xf32>
    %cst = arith.constant dense<0.000000e+00> : vector<16x128xf32>
    %6 = tpu.matmul %4, %5, %cst {dimension_numbers = #tpu.dot_dimension_numbers<[1], [1], [0], [0], [0, 0, 1, 0], [], []>} : vector<16x32xf32>, vector<128x32xf32>, vector<16x128xf32> -> vector<16x128xf32>
    %c0_5 = arith.constant 0 : index
    %c0_6 = arith.constant 0 : index
    %c0_7 = arith.constant 0 : index
    %7 = vector.load %arg3[%c0_5, %c0_6, %c0_7] : memref<2x8x1xf32, #tpu.memory_space<vmem>>, vector<2x8x1xf32>
    %8 = vector.shape_cast %7 : vector<2x8x1xf32> to vector<16x1xf32>
    %9 = vector.broadcast %8 : vector<16x1xf32> to vector<16x128xf32>
    %10 = arith.addf %6, %9 : vector<16x128xf32>
    %11 = vector.shape_cast %10 : vector<16x128xf32> to vector<2x8x128xf32>
    %cst_8 = arith.constant dense<0xFF800000> : vector<2x128xf32>
    %12 = vector.multi_reduction <maximumf>, %11, %cst_8 [1] : vector<2x8x128xf32> to vector<2x128xf32>
    %c0_9 = arith.constant 0 : index
    %c0_10 = arith.constant 0 : index
    %13 = vector.load %arg7[%c0_9, %c0_10] : memref<2x128xf32, #tpu.memory_space<vmem>>, vector<2x128xf32>
    %14 = arith.maximumf %13, %12 : vector<2x128xf32>
    %c0_11 = arith.constant 0 : index
    %c0_12 = arith.constant 0 : index
    %15 = vector.load %arg7[%c0_11, %c0_12] : memref<2x128xf32, #tpu.memory_space<vmem>>, vector<2x128xf32>
    tpu.vector_store %arg7[%c0_11, %c0_12], %14 {strides = array<i32>} : memref<2x128xf32, #tpu.memory_space<vmem>>, vector<2x128xf32>,
    %c0_i32_13 = arith.constant 0 : i32
    %16 = arith.cmpi eq, %arg1, %c0_i32_13 : i32
    %17 = arith.extui %16 : i1 to i32
    %c0_i32_14 = arith.constant 0 : i32
    %18 = arith.cmpi ne, %17, %c0_i32_14 : i32
    scf.if %18 {
      %c0_15 = arith.constant 0 : index
      %c0_16 = arith.constant 0 : index
      %19 = vector.load %arg7[%c0_15, %c0_16] : memref<2x128xf32, #tpu.memory_space<vmem>>, vector<2x128xf32>
      %c0_17 = arith.constant 0 : index
      %c0_18 = arith.constant 0 : index
      %20 = vector.load %arg5[%c0_17, %c0_18] : memref<1x128xf32, #tpu.memory_space<vmem>>, vector<1x128xf32>
      %21 = vector.broadcast %20 : vector<1x128xf32> to vector<2x128xf32>
      %22 = arith.addf %19, %21 : vector<2x128xf32>
      %c0_19 = arith.constant 0 : index
      %c0_20 = arith.constant 0 : index
      %23 = vector.load %arg6[%c0_19, %c0_20] : memref<2x128xf32, #tpu.memory_space<vmem>>, vector<2x128xf32>
      tpu.vector_store %arg6[%c0_19, %c0_20], %22 {strides = array<i32>} : memref<2x128xf32, #tpu.memory_space<vmem>>, vector<2x128xf32>,
    } else {
    }
    return
  }
  func.func @transform_0(%arg0: i32, %arg1: i32) -> (i32, i32, i32) {
    %c0_i32 = arith.constant 0 : i32
    %c0_i32_0 = arith.constant 0 : i32
    return %arg0, %arg1, %c0_i32 : i32, i32, i32
  }
  func.func @transform_1(%arg0: i32, %arg1: i32) -> (i32, i32, i32) {
    %c0_i32 = arith.constant 0 : i32
    %c0_i32_0 = arith.constant 0 : i32
    return %arg0, %arg1, %c0_i32 : i32, i32, i32
  }
  func.func @transform_2(%arg0: i32, %arg1: i32) -> (i32, i32) {
    %c0_i32 = arith.constant 0 : i32
    %c0_i32_0 = arith.constant 0 : i32
    %c0_i32_1 = arith.constant 0 : i32
    return %c0_i32, %c0_i32_0 : i32, i32
  }
  func.func @transform_3(%arg0: i32, %arg1: i32) -> (i32, i32) {
    %c0_i32 = arith.constant 0 : i32
    %c0_i32_0 = arith.constant 0 : i32
    %c0_i32_1 = arith.constant 0 : i32
    return %c0_i32, %c0_i32_0 : i32, i32
  }
  func.func @transform_4(%arg0: i32, %arg1: i32) -> (i32, i32) {
    %c0_i32 = arith.constant 0 : i32
    %c0_i32_0 = arith.constant 0 : i32
    return %arg0, %c0_i32 : i32, i32
  }
}

</mosaic_0001>

<bundles_post_ra>
// kernel: tpu_custom_call.1
= control target key start
LH: loop header
LB: loop body
LE: loop exit
PB: predicated region body
PF: predicated region fallthrough
CT: control target
= control target key end

     0   :  { %vm53_vm0 = vcmask 261120   ;;  %v378_v6 = vmov 0   ;;  %s521_s0 = inlined_call_operand.vmem [shape: f32[2,8,32], index: 0, kind: input, shape index: {}]   ;;  %s522_s1 = inlined_call_operand.vmem [shape: f32[2,8,1], index: 1, kind: input, shape index: {}]   ;;  %s523_s2 = inlined_call_operand.vmem [shape: f32[128,32], index: 2, kind: input, shape index: {}]   ;;  %s524_s3 = inlined_call_operand.vmem [shape: f32[1,128], index: 3, kind: input, shape index: {}]   ;;  %s525_s4 = inlined_call_operand.hbm [shape: f32[2,128], index: 4, kind: output, shape index: {}]  }
   0x1   :  { %v25_v0 = vld [vmem:[%s523_s2] sm:$0xff]  ;;  %v26_v1 = vld [vmem:[%s523_s2 + $0x8] sm:$0xff]  ;;  %v27_v2 = vld [vmem:[%s523_s2 + $0x10] sm:$0xff]  ;;  %353 = vset.pattern.permute.xlu0 %v378_v6 }
   0x2   :  { %v302_v3 = vpack.c.bf16 %v26_v1, %v25_v0  ;;  %vm417_vm1 = vmpackc.low %vm53_vm0, %vm53_vm0  ;;  %v28_v5 = vld [vmem:[%s523_s2 + $0x18] sm:$0xff]  ;;  %v23_v8 = vld [vmem:[%s521_s0] sm:$0xff] }
   0x3   :  { %v308_v7 = vpack.c.bf16 %v28_v5, %v27_v2  ;;  %v29_v9 = vld [vmem:[%s523_s2 + $0x20] sm:$0xff]  ;;  %v30_v10 = vld [vmem:[%s523_s2 + $0x28] sm:$0xff]  ;;  %299 = vmatprep.mubr.msk.f32.mxu0 %vm53_vm0, %v23_v8 }
   0x4   :  { %304 = vmatprep.subr.msk.bf16.mxu0 %vm417_vm1, %v302_v3  ;;  %v41_v11 = vld [vmem:[%s522_s1] sm:$0xff] }
   0x5   :  { %307 = vmatpush3.bf16.xpose.msk.msra.mxu0 %vm417_vm1, %v302_v3  ;;  %45 = vperm.xlu0 %353, %v41_v11  }
   0x6   :  { %310 = vmatprep.subr.msk.bf16.mxu0 %vm417_vm1, %v308_v7 }
   0x7   :  { %9 = vsyncpa [#allocation4], 0  ;;  %v42_v12 = vld [vmem:[%s522_s1 + $0x8] sm:$0xff]  ;;  %v314_v13 = vpack.c.bf16 %v30_v10, %v29_v9  ;;  %v31_v14 = vld [vmem:[%s523_s2 + $0x30] sm:$0xff]  ;;  %v379_v30 = vmov -inf   ;;  %vm198_vm2 = vcmask 1041409  }
   0x8   :  { %v32_v15 = vld [vmem:[%s523_s2 + $0x38] sm:$0xff]  ;;  %v33_v17 = vld [vmem:[%s523_s2 + $0x40] sm:$0xff]  ;;  %v34_v18 = vld [vmem:[%s523_s2 + $0x48] sm:$0xff]  ;;  %22 = vst [vmem:[#allocation2] sm:$0x3] %v379_v30  ;;  %s380_s28 = smov [#allocation3]  }
   0x9   :  { %50 = vperm.xlu0 %353, %v42_v12   ;;  %v320_v16 = vpack.c.bf16 %v32_v15, %v31_v14  ;;  %v326_v19 = vpack.c.bf16 %v34_v18, %v33_v17  ;;  %v35_v20 = vld [vmem:[%s523_s2 + $0x50] sm:$0xff]  ;;  %v36_v21 = vld [vmem:[%s523_s2 + $0x58] sm:$0xff]  ;;  %v37_v23 = vld [vmem:[%s523_s2 + $0x60] sm:$0xff]  ;;  %s222_s29 = sshll.u32 %s380_s28, 4  ;;  %s223_s29 = int_to_ptr.vmem [resolvable:$true] %s222_s29 }
   0xa   :  { %v332_v22 = vpack.c.bf16 %v36_v21, %v35_v20  ;;  %v38_v24 = vld [vmem:[%s523_s2 + $0x68] sm:$0xff]  ;;  %v39_v26 = vld [vmem:[%s523_s2 + $0x70] sm:$0xff]  ;;  %v40_v27 = vld [vmem:[%s523_s2 + $0x78] sm:$0xff]  ;;  %s354_s30 = scalar_lea.vmem %s223_s29, 32  ;;  %p359_p1 = scmp.lt.s32.totalorder %s223_s29, %s223_s29 }
   0xb   :  { %v338_v25 = vpack.c.bf16 %v38_v24, %v37_v23  ;;  %v344_v28 = vpack.c.bf16 %v40_v27, %v39_v26  ;;  %v24_v29 = vld [vmem:[%s521_s0 + $0x8] sm:$0xff]  ;;  %v248_v52 = vld [vmem:[%s524_s3] ss:$0 sm:$0xff]  ;;  %p355_p0 = scmp.ne.s32.totalorder %s223_s29, %s354_s30  ;;  %p360_p2 = scmp.lt.s32.totalorder %s354_s30, %s354_s30 }
   0xd   :  { %313 = vmatpush3.bf16.xpose.msk.msra.mxu0 %vm417_vm1, %v308_v7  ;;  %p361_p3 = por %p360_p2, %p359_p1 }
   0xe   :  { %316 = vmatprep.subr.msk.bf16.mxu0 %vm417_vm1, %v314_v13 }
   0xf   :  { %v195_v49 = vld [vmem:[#allocation2] sm:$0x3]  ;;  %p362_p4 = pnand %p361_p3, %p355_p0 }
  0x15   :  { %319 = vmatpush3.bf16.xpose.msk.msra.mxu0 %vm417_vm1, %v314_v13 }
  0x16   :  { %322 = vmatprep.subr.msk.bf16.mxu0 %vm417_vm1, %v320_v16 }
  0x1d   :  { %325 = vmatpush3.bf16.xpose.msk.msra.mxu0 %vm417_vm1, %v320_v16 }
  0x1e   :  { %328 = vmatprep.subr.msk.bf16.mxu0 %vm417_vm1, %v326_v19 }
  0x25   :  { %331 = vmatpush3.bf16.xpose.msk.msra.mxu0 %vm417_vm1, %v326_v19 }
  0x26   :  { %334 = vmatprep.subr.msk.bf16.mxu0 %vm417_vm1, %v332_v22 }
  0x2d   :  { %337 = vmatpush3.bf16.xpose.msk.msra.mxu0 %vm417_vm1, %v332_v22 }
  0x2e   :  { %340 = vmatprep.subr.msk.bf16.mxu0 %vm417_vm1, %v338_v25 }
  0x35   :  { %343 = vmatpush3.bf16.xpose.msk.msra.mxu0 %vm417_vm1, %v338_v25 }
  0x36   :  { %346 = vmatprep.subr.msk.bf16.mxu0 %vm417_vm1, %v344_v28 }
  0x3d   :  { %349 = vmatpush3.bf16.xpose.msk.msra.mxu0 %vm417_vm1, %v344_v28 }
  0x44   :  { %300 = vmatmul.mubr.msk.f32.vlgmr.msra.gmra.mrb[0].mxu0 %vm53_vm0, %v24_v29 }
  0x84   :  { %v46_v31 = vpop.permute.xlu0 %45 }
  0x88   :  { %v51_v32 = vpop.permute.xlu0 %50 }
 0x117   :  { %v301_v33 = vpop.f32.mrb[0].mxu0 }
 0x118   :  { %v180_v34 = vadd.f32 %v301_v33, %v51_v32  ;;  %v174_v35 = vpop.f32.mrb[1].mxu0 }
 0x119   :  { %v175_v36 = vadd.f32 %v174_v35, %v46_v31 }
 0x11a   :  { %v189_v37 = vrot.slane %v180_v34, 4 }
 0x11b   :  { %v183_v38 = vrot.slane %v175_v36, 4 }
 0x11c   :  { %v190_v39 = vmax.f32 %v180_v34, %v189_v37 }
 0x11d   :  { %v184_v40 = vmax.f32 %v175_v36, %v183_v38 }
 0x11e   :  { %v191_v41 = vrot.slane %v190_v39, 2 }
 0x11f   :  { %v185_v42 = vrot.slane %v184_v40, 2 }
 0x120   :  { %v192_v43 = vmax.f32 %v190_v39, %v191_v41 }
 0x121   :  { %v186_v44 = vmax.f32 %v184_v40, %v185_v42 }
 0x122   :  { %v193_v45 = vrot.slane %v192_v43, 1 }
 0x123   :  { %v187_v46 = vrot.slane %v186_v44, 1 }
 0x124   :  { %v194_v47 = vmax.f32 %v192_v43, %v193_v45 }
 0x125   :  { %v188_v48 = vmax.f32 %v186_v44, %v187_v46 }
 0x127   :  { %v199_v50 = vsel %vm198_vm2, %v194_v47, %v188_v48 }
 0x128   :  { %v201_v51 = vmax.f32 %v195_v49, %v199_v50 }
 0x12a   :  { %202 = vst [vmem:[#allocation2] sm:$0x3] %v201_v51 }
 0x131   :  { %v206_v53 = vld [vmem:[#allocation2] sm:$0x3] }
 0x132   :  { %v214_v54 = vadd.f32 %v248_v52, %v206_v53 }
 0x134   :  { %215 = vst [vmem:[#allocation3] sm:$0x3] %v214_v54 }
 0x135   :  { %365 = shalt.err (!%p362_p4)
}
 0x136   :  { %s366_s7 = scalar_lea.hbm %s525_s4, 32 }
 0x137   :  { %p367_p5 = scmp.ne.s32.totalorder %s525_s4, %s366_s7  ;;  %p370_p6 = scmp.lt.u32.totalorder %s366_s7, %s525_s4 }
 0x139   :  { %p372_p7 = pnand %p370_p6, %p367_p5 }
 0x13b   :  { %375 = shalt.err (!%p372_p7)
}
 0x13c   :  { %225 = dma.vmem_to_hbm [thread:$0]  %s223_s29, 32, %s525_s4, [#allocation4]  }
 0x13d   :  { %376 = dma.done.wait [#allocation4], 32  }
 0x13e   :  { %377 = vsyncadd [#allocation4], 4294967264 }
 0x13f   :  { %229 = vsyncpa [#allocation4], 1 }

</bundles_post_ra>
